<compile_context>
chip_gen: v7x
topology: tpu7x:2x2x1
jax: 0.10.0
libtpu: 0.0.40
codegen_flags: <defaults>
</compile_context>

<pallas_src>
import functools

import jax
import jax.numpy as jnp
from jax.experimental import pallas as pl
from jax.experimental.pallas import tpu as pltpu


def _round_up(x, m):
    return ((x + m - 1) // m) * m


def xc1x1_kernel(x_ref, wall_ref, ball_ref, w11e_ref, b11_ref, o_ref, taps_ref, *,
                 cin, cpad, cout, wp, hwp, l_img, n_img):
    # x_ref   : (1, B*Cin, H*Wp)  left/right-padded rows, flattened (channel-major)
    # wall_ref: (2*Cout, 9*cpad)  fused [densified grouped 3x3 ; center 1x1] weights
    # ball_ref: (2*Cout, 1) f32   fused [bs ; bc]
    # w11e_ref: (Cout, 2*Cout) f32  [conv1_1 weight, -I]  (fused final subtraction)
    # b11_ref : (Cout, 1) f32
    # o_ref   : (1, B*Cout, Lout) channel-major output over the padded flat grid
    # taps_ref: (9*cpad, B*Lout)  VMEM scratch holding the 9 shifted taps
    zdt = taps_ref.dtype
    for b in range(n_img):
        base = b * l_img
        for t in range(9):
            ky, kx = divmod(t, 3)
            d = (ky - 2) * wp + (kx - 1)           # x_flat index = output index + d
            lo, hi = max(0, -d), min(l_img, hwp - d)
            r0 = t * cpad
            # Zeros for the top/bottom padding rows + lane round-up tail.  Rewritten
            # every step (see header note on megacore-split scratch) -- cheap.
            if lo > 0:
                taps_ref[r0:r0 + cpad, base:base + lo] = jnp.zeros((cpad, lo), zdt)
            if hi < l_img:
                taps_ref[r0:r0 + cpad, base + hi:base + l_img] = jnp.zeros(
                    (cpad, l_img - hi), zdt)
            # The shifted image slab for this tap: a static lane slice of the block.
            taps_ref[r0:r0 + cin, base + lo:base + hi] = (
                x_ref[0, b * cin:(b + 1) * cin, lo + d:hi + d])
            if cpad > cin:                          # sublane-alignment padding rows
                taps_ref[r0 + cin:r0 + cpad, base + lo:base + hi] = jnp.zeros(
                    (cpad - cin, hi - lo), zdt)

    # One fused MXU matmul: rows [0:Cout) = surround (grouped 3x3) pre-activation,
    # rows [Cout:2*Cout) = center (1x1) pre-activation.  K = 9*cpad, N = B*Lout.
    pre = jnp.dot(wall_ref[...], taps_ref[...], preferred_element_type=jnp.float32)
    pre = jnp.maximum(pre + ball_ref[...], 0.0)     # bias + ReLU for both paths

    # conv1_1 with the center subtraction folded in: [w11, -I] @ [surr; cent] + b11.
    out = jnp.dot(w11e_ref[...], pre, preferred_element_type=jnp.float32) + b11_ref[...]
    for b in range(n_img):
        o_ref[0, b * cout:(b + 1) * cout, :] = (
            out[:, b * l_img:(b + 1) * l_img].astype(o_ref.dtype))


def xc1x1_forward(x_nchw, fused_params, *, compute_dtype=jnp.float32):
    """Xc1x1 forward. x_nchw: (N, Cin, H, W) float32 -> (N, Cout, H, W) float32."""
    wall, ball, w11e, b11 = fused_params
    N, Cin, H, W = x_nchw.shape
    Cout = w11e.shape[0]
    Hp, Wp = H + 2, W + 2
    P, HWp = Hp * Wp, H * Wp
    Lout = _round_up(P, 128)                 # lane-dense per-image output width
    Kp = wall.shape[1]
    cpad = Kp // 9
    isz = 2 if compute_dtype == jnp.bfloat16 else 4

    # Grid / per-step batch: keep >=2 grid steps when N >= 2 (both v7x TensorCores
    # get work) while capping the per-step VMEM footprint.
    per_img = Kp * Lout * isz + 2 * Cin * HWp * isz + 2 * Cout * Lout * 4
    B = max(1, min(N if N < 2 else N // 2, (24 * 2 ** 20) // max(per_img, 1)))
    while N % B:
        B -= 1
    G = N // B

    # Single wrapper-side HBM pad: left/right zero columns only.  Everything else
    # (top/bottom rows, lane tail, K padding) is zero-filled inside the kernel.
    x_flat = (jnp.pad(x_nchw, ((0, 0), (0, 0), (0, 0), (1, 1)))
              .astype(compute_dtype).reshape(G, B * Cin, HWp))

    kernel = functools.partial(xc1x1_kernel, cin=Cin, cpad=cpad, cout=Cout, wp=Wp,
                               hwp=HWp, l_img=Lout, n_img=B)

    vmem_need = (Kp * B * Lout * isz             # taps scratch
                 + 2 * B * Cin * HWp * isz       # double-buffered input blocks
                 + 2 * B * Cout * Lout * 4       # double-buffered output blocks
                 + 2 * Cout * Kp * isz + 16 * Cout * Cout)
    try:                                         # scope VMEM per TPU generation
        vmem_phys = pltpu.get_tpu_info().vmem_capacity_bytes
    except Exception:
        vmem_phys = 64 * 2 ** 20                 # conservative (v7x per-TC)
    vmem_limit = int(min(int(0.75 * vmem_phys), max(32 * 2 ** 20, 2 * vmem_need)))

    out_k = pl.pallas_call(
        kernel,
        out_shape=jax.ShapeDtypeStruct((G, B * Cout, Lout), x_nchw.dtype),
        grid_spec=pltpu.PrefetchScalarGridSpec(
            num_scalar_prefetch=0,
            grid=(G,),
            in_specs=[
                pl.BlockSpec((1, B * Cin, HWp), lambda g: (g, 0, 0)),
                pl.BlockSpec((2 * Cout, Kp), lambda g: (0, 0)),
                pl.BlockSpec((2 * Cout, 1), lambda g: (0, 0)),
                pl.BlockSpec((Cout, 2 * Cout), lambda g: (0, 0)),
                pl.BlockSpec((Cout, 1), lambda g: (0, 0)),
            ],
            out_specs=pl.BlockSpec((1, B * Cout, Lout), lambda g: (g, 0, 0)),
            scratch_shapes=[pltpu.VMEM((Kp, B * Lout), compute_dtype)],
        ),
        compiler_params=pltpu.CompilerParams(
            dimension_semantics=("parallel",),
            vmem_limit_bytes=vmem_limit,
        ),
    )(x_flat, wall, ball, w11e, b11)

    # Channel-major output maps straight back to NCHW: slice the valid flat indices,
    # unflatten to the padded grid, drop the padding ring.
    return (out_k.reshape(N, Cout, Lout)[:, :, :P]
                 .reshape(N, Cout, Hp, Wp)[:, :, 1:H + 1, 1:W + 1])


def make_params(key, in_channels, out_channels):
    """Deterministic parameters in PyTorch (OIHW) shapes."""
    Cin, Cout = in_channels, out_channels
    assert Cout % Cin == 0, "groups=in_channels requires out_channels % in_channels == 0"
    ks = jax.random.split(key, 6)
    scale = 0.1
    wc = jax.random.normal(ks[0], (Cout, Cin, 1, 1), jnp.float32) * scale   # Xcenter
    bc = jax.random.normal(ks[1], (Cout,), jnp.float32) * scale
    wg = jax.random.normal(ks[2], (Cout, 1, 3, 3), jnp.float32) * scale     # Xsurround
    bs = jax.random.normal(ks[3], (Cout,), jnp.float32) * scale
    w11 = jax.random.normal(ks[4], (Cout, Cout, 1, 1), jnp.float32) * scale  # conv1_1
    b11 = jax.random.normal(ks[5], (Cout,), jnp.float32) * scale
    return (wc, bc, wg, bs, w11, b11)


def fuse_params(torch_params, compute_dtype=jnp.float32):
    """PyTorch-shaped params -> fused kernel layout (and the per-tap channel pad)."""
    wc, bc, wg, bs, w11, b11 = torch_params
    Cout, Cin = wc.shape[0], wc.shape[1]
    sub = 16 if compute_dtype == jnp.bfloat16 else 8     # sublane pack per dtype
    cpad = _round_up(Cin, sub)
    Cmul = Cout // Cin
    group = jnp.arange(Cout) // Cmul                                        # (Cout,)
    gmask = (jnp.arange(Cin)[None, :] == group[:, None]).astype(jnp.float32)
    # densified grouped 3x3, tap index t = ky*3 + kx -> (Cout, 9, Cin)
    ws = wg.reshape(Cout, 9)[:, :, None] * gmask[:, None, :]
    # center 1x1 placed in the center-tap (t=4) K slot
    wc_t = jnp.zeros((Cout, 9, Cin), jnp.float32).at[:, 4, :].set(wc[:, :, 0, 0])
    wall = jnp.concatenate([ws, wc_t], axis=0)                              # (2Cout,9,Cin)
    wall = jnp.pad(wall, ((0, 0), (0, 0), (0, cpad - Cin)))                 # sublane pad
    wall = wall.reshape(2 * Cout, 9 * cpad).astype(compute_dtype)
    ball = jnp.concatenate([bs, bc]).reshape(2 * Cout, 1).astype(jnp.float32)
    # conv1_1 with the center subtraction fused: [w11, -I]
    w11e = jnp.concatenate([w11[:, :, 0, 0], -jnp.eye(Cout, dtype=jnp.float32)], axis=1)
    b11k = b11.reshape(Cout, 1).astype(jnp.float32)
    return (wall, ball, w11e, b11k)


def reference_nchw(x, torch_params, in_channels):
    """Pure-JAX replica of the PyTorch forward (NCHW, cross-correlation convs)."""
    wc, bc, wg, bs, w11, b11 = torch_params
    dn = ("NCHW", "OIHW", "NCHW")
    hp = jax.lax.Precision.HIGHEST
    center = jax.lax.conv_general_dilated(x, wc, (1, 1), "VALID",
                                          dimension_numbers=dn, precision=hp)
    center = jnp.maximum(center + bc[None, :, None, None], 0.0)
    surr = jax.lax.conv_general_dilated(x, wg, (1, 1), ((1, 1), (1, 1)),
                                        dimension_numbers=dn,
                                        feature_group_count=in_channels, precision=hp)
    surr = jnp.maximum(surr + bs[None, :, None, None], 0.0)
    surr = jax.lax.conv_general_dilated(surr, w11, (1, 1), "VALID",
                                        dimension_numbers=dn, precision=hp)
    surr = surr + b11[None, :, None, None]
    return surr - center


def _quantize(a, dtype):
    return a.astype(dtype).astype(jnp.float32)


if __name__ == "__main__":
    N, Cin, Cout, H, W = 2, 4, 8, 16, 16

    key = jax.random.PRNGKey(0)
    k_param, k_x = jax.random.split(key)
    torch_params = make_params(k_param, Cin, Cout)
    x = jax.random.normal(k_x, (N, Cin, H, W), jnp.float32)

    ref = jax.block_until_ready(reference_nchw(x, torch_params, Cin))

    # ---- f32 compute path: tight check against a HIGHEST-precision reference ----
    fused_f32 = fuse_params(torch_params, jnp.float32)
    out_f32 = jax.block_until_ready(
        xc1x1_forward(x, fused_f32, compute_dtype=jnp.float32))
    assert out_f32.shape == (N, Cout, H, W)
    err32 = float(jnp.max(jnp.abs(out_f32 - ref)))
    assert jnp.allclose(out_f32, ref, atol=5e-3, rtol=5e-3), f"f32 max abs err = {err32}"

    # ---- bf16 compute path (halved HBM/tap traffic): check against a reference ----
    # computed from identically bf16-quantized x / conv weights (f32 accumulate).
    fused_bf16 = fuse_params(torch_params, jnp.bfloat16)
    out_bf16 = jax.block_until_ready(
        xc1x1_forward(x, fused_bf16, compute_dtype=jnp.bfloat16))
    wc, bc, wg, bs, w11, b11 = torch_params
    q_params = (_quantize(wc, jnp.bfloat16), bc, _quantize(wg, jnp.bfloat16), bs, w11, b11)
    ref_q = jax.block_until_ready(
        reference_nchw(_quantize(x, jnp.bfloat16), q_params, Cin))
    errbf = float(jnp.max(jnp.abs(out_bf16 - ref_q)))
    assert jnp.allclose(out_bf16, ref_q, atol=3e-2, rtol=3e-2), f"bf16 max abs err = {errbf}"

    print("KERNEL_OK")
</pallas_src>

<mosaic_0001>
module attributes {stable_mosaic.version = 11 : i64} {
  func.func @xc1x1_kernel(%arg0: i32, %arg1: memref<1x4x288xf32, #tpu.memory_space<vmem>>, %arg2: memref<16x72xf32, #tpu.memory_space<vmem>>, %arg3: memref<16x1xf32, #tpu.memory_space<vmem>>, %arg4: memref<8x16xf32, #tpu.memory_space<vmem>>, %arg5: memref<8x1xf32, #tpu.memory_space<vmem>>, %arg6: memref<1x8x384xf32, #tpu.memory_space<vmem>>, %arg7: memref<72x384xf32, #tpu.memory_space<vmem>>) attributes {dimension_semantics = [#tpu.dimension_semantics<parallel>], iteration_bounds = array<i64: 2>, scalar_prefetch = 0 : i64, scratch_operands = 1 : i64, tpu.core_type = #tpu.core_type<tc>, window_params = [{transform_indices = @transform_0, window_bounds = array<i64: 1, 4, 288>}, {pipeline_mode = #tpu.pipeline_mode<synchronous>, transform_indices = @transform_1, window_bounds = array<i64: 16, 72>}, {pipeline_mode = #tpu.pipeline_mode<synchronous>, transform_indices = @transform_2, window_bounds = array<i64: 16, 1>}, {pipeline_mode = #tpu.pipeline_mode<synchronous>, transform_indices = @transform_3, window_bounds = array<i64: 8, 16>}, {pipeline_mode = #tpu.pipeline_mode<synchronous>, transform_indices = @transform_4, window_bounds = array<i64: 8, 1>}, {transform_indices = @transform_5, window_bounds = array<i64: 1, 8, 384>}]} {
    %cst = arith.constant 0.000000e+00 : f32
    %0 = vector.broadcast %cst : f32 to vector<8x37xf32>
    %c0 = arith.constant 0 : index
    %c0_0 = arith.constant 0 : index
    %1 = vector.load %arg7[%c0, %c0_0] : memref<72x384xf32, #tpu.memory_space<vmem>>, vector<8x37xf32>
    tpu.vector_store %arg7[%c0, %c0_0], %0 {strides = array<i32>} : memref<72x384xf32, #tpu.memory_space<vmem>>, vector<8x37xf32>,
    %cst_1 = arith.constant 0.000000e+00 : f32
    %2 = vector.broadcast %cst_1 : f32 to vector<8x59xf32>
    %c0_2 = arith.constant 0 : index
    %c325 = arith.constant 325 : index
    %3 = vector.load %arg7[%c0_2, %c325] : memref<72x384xf32, #tpu.memory_space<vmem>>, vector<8x59xf32>
    tpu.vector_store %arg7[%c0_2, %c325], %2 {strides = array<i32>} : memref<72x384xf32, #tpu.memory_space<vmem>>, vector<8x59xf32>,
    %c0_3 = arith.constant 0 : index
    %c0_4 = arith.constant 0 : index
    %c0_5 = arith.constant 0 : index
    %4 = vector.load %arg1[%c0_3, %c0_4, %c0_5] : memref<1x4x288xf32, #tpu.memory_space<vmem>>, vector<1x4x288xf32>
    %5 = vector.shape_cast %4 : vector<1x4x288xf32> to vector<4x288xf32>
    %c0_6 = arith.constant 0 : index
    %c37 = arith.constant 37 : index
    %6 = vector.load %arg7[%c0_6, %c37] : memref<72x384xf32, #tpu.memory_space<vmem>>, vector<4x288xf32>
    tpu.vector_store %arg7[%c0_6, %c37], %5 {strides = array<i32>} : memref<72x384xf32, #tpu.memory_space<vmem>>, vector<4x288xf32>,
    %cst_7 = arith.constant 0.000000e+00 : f32
    %7 = vector.broadcast %cst_7 : f32 to vector<4x288xf32>
    %c4 = arith.constant 4 : index
    %c37_8 = arith.constant 37 : index
    %8 = vector.load %arg7[%c4, %c37_8] : memref<72x384xf32, #tpu.memory_space<vmem>>, vector<4x288xf32>
    tpu.vector_store %arg7[%c4, %c37_8], %7 {strides = array<i32>} : memref<72x384xf32, #tpu.memory_space<vmem>>, vector<4x288xf32>,
    %cst_9 = arith.constant 0.000000e+00 : f32
    %9 = vector.broadcast %cst_9 : f32 to vector<8x36xf32>
    %c8 = arith.constant 8 : index
    %c0_10 = arith.constant 0 : index
    %10 = vector.load %arg7[%c8, %c0_10] : memref<72x384xf32, #tpu.memory_space<vmem>>, vector<8x36xf32>
    tpu.vector_store %arg7[%c8, %c0_10], %9 {strides = array<i32>} : memref<72x384xf32, #tpu.memory_space<vmem>>, vector<8x36xf32>,
    %cst_11 = arith.constant 0.000000e+00 : f32
    %11 = vector.broadcast %cst_11 : f32 to vector<8x60xf32>
    %c8_12 = arith.constant 8 : index
    %c324 = arith.constant 324 : index
    %12 = vector.load %arg7[%c8_12, %c324] : memref<72x384xf32, #tpu.memory_space<vmem>>, vector<8x60xf32>
    tpu.vector_store %arg7[%c8_12, %c324], %11 {strides = array<i32>} : memref<72x384xf32, #tpu.memory_space<vmem>>, vector<8x60xf32>,
    %c0_13 = arith.constant 0 : index
    %c0_14 = arith.constant 0 : index
    %c0_15 = arith.constant 0 : index
    %13 = vector.load %arg1[%c0_13, %c0_14, %c0_15] : memref<1x4x288xf32, #tpu.memory_space<vmem>>, vector<1x4x288xf32>
    %14 = vector.shape_cast %13 : vector<1x4x288xf32> to vector<4x288xf32>
    %c8_16 = arith.constant 8 : index
    %c36 = arith.constant 36 : index
    %15 = vector.load %arg7[%c8_16, %c36] : memref<72x384xf32, #tpu.memory_space<vmem>>, vector<4x288xf32>
    tpu.vector_store %arg7[%c8_16, %c36], %14 {strides = array<i32>} : memref<72x384xf32, #tpu.memory_space<vmem>>, vector<4x288xf32>,
    %cst_17 = arith.constant 0.000000e+00 : f32
    %16 = vector.broadcast %cst_17 : f32 to vector<4x288xf32>
    %c12 = arith.constant 12 : index
    %c36_18 = arith.constant 36 : index
    %17 = vector.load %arg7[%c12, %c36_18] : memref<72x384xf32, #tpu.memory_space<vmem>>, vector<4x288xf32>
    tpu.vector_store %arg7[%c12, %c36_18], %16 {strides = array<i32>} : memref<72x384xf32, #tpu.memory_space<vmem>>, vector<4x288xf32>,
    %cst_19 = arith.constant 0.000000e+00 : f32
    %18 = vector.broadcast %cst_19 : f32 to vector<8x35xf32>
    %c16 = arith.constant 16 : index
    %c0_20 = arith.constant 0 : index
    %19 = vector.load %arg7[%c16, %c0_20] : memref<72x384xf32, #tpu.memory_space<vmem>>, vector<8x35xf32>
    tpu.vector_store %arg7[%c16, %c0_20], %18 {strides = array<i32>} : memref<72x384xf32, #tpu.memory_space<vmem>>, vector<8x35xf32>,
    %cst_21 = arith.constant 0.000000e+00 : f32
    %20 = vector.broadcast %cst_21 : f32 to vector<8x61xf32>
    %c16_22 = arith.constant 16 : index
    %c323 = arith.constant 323 : index
    %21 = vector.load %arg7[%c16_22, %c323] : memref<72x384xf32, #tpu.memory_space<vmem>>, vector<8x61xf32>
    tpu.vector_store %arg7[%c16_22, %c323], %20 {strides = array<i32>} : memref<72x384xf32, #tpu.memory_space<vmem>>, vector<8x61xf32>,
    %c0_23 = arith.constant 0 : index
    %c0_24 = arith.constant 0 : index
    %c0_25 = arith.constant 0 : index
    %22 = vector.load %arg1[%c0_23, %c0_24, %c0_25] : memref<1x4x288xf32, #tpu.memory_space<vmem>>, vector<1x4x288xf32>
    %23 = vector.shape_cast %22 : vector<1x4x288xf32> to vector<4x288xf32>
    %c16_26 = arith.constant 16 : index
    %c35 = arith.constant 35 : index
    %24 = vector.load %arg7[%c16_26, %c35] : memref<72x384xf32, #tpu.memory_space<vmem>>, vector<4x288xf32>
    tpu.vector_store %arg7[%c16_26, %c35], %23 {strides = array<i32>} : memref<72x384xf32, #tpu.memory_space<vmem>>, vector<4x288xf32>,
    %cst_27 = arith.constant 0.000000e+00 : f32
    %25 = vector.broadcast %cst_27 : f32 to vector<4x288xf32>
    %c20 = arith.constant 20 : index
    %c35_28 = arith.constant 35 : index
    %26 = vector.load %arg7[%c20, %c35_28] : memref<72x384xf32, #tpu.memory_space<vmem>>, vector<4x288xf32>
    tpu.vector_store %arg7[%c20, %c35_28], %25 {strides = array<i32>} : memref<72x384xf32, #tpu.memory_space<vmem>>, vector<4x288xf32>,
    %cst_29 = arith.constant 0.000000e+00 : f32
    %27 = vector.broadcast %cst_29 : f32 to vector<8x19xf32>
    %c24 = arith.constant 24 : index
    %c0_30 = arith.constant 0 : index
    %28 = vector.load %arg7[%c24, %c0_30] : memref<72x384xf32, #tpu.memory_space<vmem>>, vector<8x19xf32>
    tpu.vector_store %arg7[%c24, %c0_30], %27 {strides = array<i32>} : memref<72x384xf32, #tpu.memory_space<vmem>>, vector<8x19xf32>,
    %cst_31 = arith.constant 0.000000e+00 : f32
    %29 = vector.broadcast %cst_31 : f32 to vector<8x77xf32>
    %c24_32 = arith.constant 24 : index
    %c307 = arith.constant 307 : index
    %30 = vector.load %arg7[%c24_32, %c307] : memref<72x384xf32, #tpu.memory_space<vmem>>, vector<8x77xf32>
    tpu.vector_store %arg7[%c24_32, %c307], %29 {strides = array<i32>} : memref<72x384xf32, #tpu.memory_space<vmem>>, vector<8x77xf32>,
    %c0_33 = arith.constant 0 : index
    %c0_34 = arith.constant 0 : index
    %c0_35 = arith.constant 0 : index
    %31 = vector.load %arg1[%c0_33, %c0_34, %c0_35] : memref<1x4x288xf32, #tpu.memory_space<vmem>>, vector<1x4x288xf32>
    %32 = vector.shape_cast %31 : vector<1x4x288xf32> to vector<4x288xf32>
    %c24_36 = arith.constant 24 : index
    %c19 = arith.constant 19 : index
    %33 = vector.load %arg7[%c24_36, %c19] : memref<72x384xf32, #tpu.memory_space<vmem>>, vector<4x288xf32>
    tpu.vector_store %arg7[%c24_36, %c19], %32 {strides = array<i32>} : memref<72x384xf32, #tpu.memory_space<vmem>>, vector<4x288xf32>,
    %cst_37 = arith.constant 0.000000e+00 : f32
    %34 = vector.broadcast %cst_37 : f32 to vector<4x288xf32>
    %c28 = arith.constant 28 : index
    %c19_38 = arith.constant 19 : index
    %35 = vector.load %arg7[%c28, %c19_38] : memref<72x384xf32, #tpu.memory_space<vmem>>, vector<4x288xf32>
    tpu.vector_store %arg7[%c28, %c19_38], %34 {strides = array<i32>} : memref<72x384xf32, #tpu.memory_space<vmem>>, vector<4x288xf32>,
    %cst_39 = arith.constant 0.000000e+00 : f32
    %36 = vector.broadcast %cst_39 : f32 to vector<8x18xf32>
    %c32 = arith.constant 32 : index
    %c0_40 = arith.constant 0 : index
    %37 = vector.load %arg7[%c32, %c0_40] : memref<72x384xf32, #tpu.memory_space<vmem>>, vector<8x18xf32>
    tpu.vector_store %arg7[%c32, %c0_40], %36 {strides = array<i32>} : memref<72x384xf32, #tpu.memory_space<vmem>>, vector<8x18xf32>,
    %cst_41 = arith.constant 0.000000e+00 : f32
    %38 = vector.broadcast %cst_41 : f32 to vector<8x78xf32>
    %c32_42 = arith.constant 32 : index
    %c306 = arith.constant 306 : index
    %39 = vector.load %arg7[%c32_42, %c306] : memref<72x384xf32, #tpu.memory_space<vmem>>, vector<8x78xf32>
    tpu.vector_store %arg7[%c32_42, %c306], %38 {strides = array<i32>} : memref<72x384xf32, #tpu.memory_space<vmem>>, vector<8x78xf32>,
    %c0_43 = arith.constant 0 : index
    %c0_44 = arith.constant 0 : index
    %c0_45 = arith.constant 0 : index
    %40 = vector.load %arg1[%c0_43, %c0_44, %c0_45] : memref<1x4x288xf32, #tpu.memory_space<vmem>>, vector<1x4x288xf32>
    %41 = vector.shape_cast %40 : vector<1x4x288xf32> to vector<4x288xf32>
    %c32_46 = arith.constant 32 : index
    %c18 = arith.constant 18 : index
    %42 = vector.load %arg7[%c32_46, %c18] : memref<72x384xf32, #tpu.memory_space<vmem>>, vector<4x288xf32>
    tpu.vector_store %arg7[%c32_46, %c18], %41 {strides = array<i32>} : memref<72x384xf32, #tpu.memory_space<vmem>>, vector<4x288xf32>,
    %cst_47 = arith.constant 0.000000e+00 : f32
    %43 = vector.broadcast %cst_47 : f32 to vector<4x288xf32>
    %c36_48 = arith.constant 36 : index
    %c18_49 = arith.constant 18 : index
    %44 = vector.load %arg7[%c36_48, %c18_49] : memref<72x384xf32, #tpu.memory_space<vmem>>, vector<4x288xf32>
    tpu.vector_store %arg7[%c36_48, %c18_49], %43 {strides = array<i32>} : memref<72x384xf32, #tpu.memory_space<vmem>>, vector<4x288xf32>,
    %cst_50 = arith.constant 0.000000e+00 : f32
    %45 = vector.broadcast %cst_50 : f32 to vector<8x17xf32>
    %c40 = arith.constant 40 : index
    %c0_51 = arith.constant 0 : index
    %46 = vector.load %arg7[%c40, %c0_51] : memref<72x384xf32, #tpu.memory_space<vmem>>, vector<8x17xf32>
    tpu.vector_store %arg7[%c40, %c0_51], %45 {strides = array<i32>} : memref<72x384xf32, #tpu.memory_space<vmem>>, vector<8x17xf32>,
    %cst_52 = arith.constant 0.000000e+00 : f32
    %47 = vector.broadcast %cst_52 : f32 to vector<8x79xf32>
    %c40_53 = arith.constant 40 : index
    %c305 = arith.constant 305 : index
    %48 = vector.load %arg7[%c40_53, %c305] : memref<72x384xf32, #tpu.memory_space<vmem>>, vector<8x79xf32>
    tpu.vector_store %arg7[%c40_53, %c305], %47 {strides = array<i32>} : memref<72x384xf32, #tpu.memory_space<vmem>>, vector<8x79xf32>,
    %c0_54 = arith.constant 0 : index
    %c0_55 = arith.constant 0 : index
    %c0_56 = arith.constant 0 : index
    %49 = vector.load %arg1[%c0_54, %c0_55, %c0_56] : memref<1x4x288xf32, #tpu.memory_space<vmem>>, vector<1x4x288xf32>
    %50 = vector.shape_cast %49 : vector<1x4x288xf32> to vector<4x288xf32>
    %c40_57 = arith.constant 40 : index
    %c17 = arith.constant 17 : index
    %51 = vector.load %arg7[%c40_57, %c17] : memref<72x384xf32, #tpu.memory_space<vmem>>, vector<4x288xf32>
    tpu.vector_store %arg7[%c40_57, %c17], %50 {strides = array<i32>} : memref<72x384xf32, #tpu.memory_space<vmem>>, vector<4x288xf32>,
    %cst_58 = arith.constant 0.000000e+00 : f32
    %52 = vector.broadcast %cst_58 : f32 to vector<4x288xf32>
    %c44 = arith.constant 44 : index
    %c17_59 = arith.constant 17 : index
    %53 = vector.load %arg7[%c44, %c17_59] : memref<72x384xf32, #tpu.memory_space<vmem>>, vector<4x288xf32>
    tpu.vector_store %arg7[%c44, %c17_59], %52 {strides = array<i32>} : memref<72x384xf32, #tpu.memory_space<vmem>>, vector<4x288xf32>,
    %cst_60 = arith.constant 0.000000e+00 : f32
    %54 = vector.broadcast %cst_60 : f32 to vector<8x1xf32>
    %c48 = arith.constant 48 : index
    %c0_61 = arith.constant 0 : index
    %55 = vector.load %arg7[%c48, %c0_61] : memref<72x384xf32, #tpu.memory_space<vmem>>, vector<8x1xf32>
    tpu.vector_store %arg7[%c48, %c0_61], %54 {strides = array<i32>} : memref<72x384xf32, #tpu.memory_space<vmem>>, vector<8x1xf32>,
    %cst_62 = arith.constant 0.000000e+00 : f32
    %56 = vector.broadcast %cst_62 : f32 to vector<8x95xf32>
    %c48_63 = arith.constant 48 : index
    %c289 = arith.constant 289 : index
    %57 = vector.load %arg7[%c48_63, %c289] : memref<72x384xf32, #tpu.memory_space<vmem>>, vector<8x95xf32>
    tpu.vector_store %arg7[%c48_63, %c289], %56 {strides = array<i32>} : memref<72x384xf32, #tpu.memory_space<vmem>>, vector<8x95xf32>,
    %c0_64 = arith.constant 0 : index
    %c0_65 = arith.constant 0 : index
    %c0_66 = arith.constant 0 : index
    %58 = vector.load %arg1[%c0_64, %c0_65, %c0_66] : memref<1x4x288xf32, #tpu.memory_space<vmem>>, vector<1x4x288xf32>
    %59 = vector.shape_cast %58 : vector<1x4x288xf32> to vector<4x288xf32>
    %c48_67 = arith.constant 48 : index
    %c1 = arith.constant 1 : index
    %60 = vector.load %arg7[%c48_67, %c1] : memref<72x384xf32, #tpu.memory_space<vmem>>, vector<4x288xf32>
    tpu.vector_store %arg7[%c48_67, %c1], %59 {strides = array<i32>} : memref<72x384xf32, #tpu.memory_space<vmem>>, vector<4x288xf32>,
    %cst_68 = arith.constant 0.000000e+00 : f32
    %61 = vector.broadcast %cst_68 : f32 to vector<4x288xf32>
    %c52 = arith.constant 52 : index
    %c1_69 = arith.constant 1 : index
    %62 = vector.load %arg7[%c52, %c1_69] : memref<72x384xf32, #tpu.memory_space<vmem>>, vector<4x288xf32>
    tpu.vector_store %arg7[%c52, %c1_69], %61 {strides = array<i32>} : memref<72x384xf32, #tpu.memory_space<vmem>>, vector<4x288xf32>,
    %cst_70 = arith.constant 0.000000e+00 : f32
    %63 = vector.broadcast %cst_70 : f32 to vector<8x96xf32>
    %c56 = arith.constant 56 : index
    %c288 = arith.constant 288 : index
    %64 = vector.load %arg7[%c56, %c288] : memref<72x384xf32, #tpu.memory_space<vmem>>, vector<8x96xf32>
    tpu.vector_store %arg7[%c56, %c288], %63 {strides = array<i32>} : memref<72x384xf32, #tpu.memory_space<vmem>>, vector<8x96xf32>,
    %c0_71 = arith.constant 0 : index
    %c0_72 = arith.constant 0 : index
    %c0_73 = arith.constant 0 : index
    %65 = vector.load %arg1[%c0_71, %c0_72, %c0_73] : memref<1x4x288xf32, #tpu.memory_space<vmem>>, vector<1x4x288xf32>
    %66 = vector.shape_cast %65 : vector<1x4x288xf32> to vector<4x288xf32>
    %c56_74 = arith.constant 56 : index
    %c0_75 = arith.constant 0 : index
    %67 = vector.load %arg7[%c56_74, %c0_75] : memref<72x384xf32, #tpu.memory_space<vmem>>, vector<4x288xf32>
    tpu.vector_store %arg7[%c56_74, %c0_75], %66 {strides = array<i32>} : memref<72x384xf32, #tpu.memory_space<vmem>>, vector<4x288xf32>,
    %cst_76 = arith.constant 0.000000e+00 : f32
    %68 = vector.broadcast %cst_76 : f32 to vector<4x288xf32>
    %c60 = arith.constant 60 : index
    %c0_77 = arith.constant 0 : index
    %69 = vector.load %arg7[%c60, %c0_77] : memref<72x384xf32, #tpu.memory_space<vmem>>, vector<4x288xf32>
    tpu.vector_store %arg7[%c60, %c0_77], %68 {strides = array<i32>} : memref<72x384xf32, #tpu.memory_space<vmem>>, vector<4x288xf32>,
    %cst_78 = arith.constant 0.000000e+00 : f32
    %70 = vector.broadcast %cst_78 : f32 to vector<8x97xf32>
    %c64 = arith.constant 64 : index
    %c287 = arith.constant 287 : index
    %71 = vector.load %arg7[%c64, %c287] : memref<72x384xf32, #tpu.memory_space<vmem>>, vector<8x97xf32>
    tpu.vector_store %arg7[%c64, %c287], %70 {strides = array<i32>} : memref<72x384xf32, #tpu.memory_space<vmem>>, vector<8x97xf32>,
    %c0_79 = arith.constant 0 : index
    %c0_80 = arith.constant 0 : index
    %c1_81 = arith.constant 1 : index
    %72 = vector.load %arg1[%c0_79, %c0_80, %c1_81] : memref<1x4x288xf32, #tpu.memory_space<vmem>>, vector<1x4x287xf32>
    %73 = vector.shape_cast %72 : vector<1x4x287xf32> to vector<4x287xf32>
    %c64_82 = arith.constant 64 : index
    %c0_83 = arith.constant 0 : index
    %74 = vector.load %arg7[%c64_82, %c0_83] : memref<72x384xf32, #tpu.memory_space<vmem>>, vector<4x287xf32>
    tpu.vector_store %arg7[%c64_82, %c0_83], %73 {strides = array<i32>} : memref<72x384xf32, #tpu.memory_space<vmem>>, vector<4x287xf32>,
    %cst_84 = arith.constant 0.000000e+00 : f32
    %75 = vector.broadcast %cst_84 : f32 to vector<4x287xf32>
    %c68 = arith.constant 68 : index
    %c0_85 = arith.constant 0 : index
    %76 = vector.load %arg7[%c68, %c0_85] : memref<72x384xf32, #tpu.memory_space<vmem>>, vector<4x287xf32>
    tpu.vector_store %arg7[%c68, %c0_85], %75 {strides = array<i32>} : memref<72x384xf32, #tpu.memory_space<vmem>>, vector<4x287xf32>,
    %c0_86 = arith.constant 0 : index
    %c0_87 = arith.constant 0 : index
    %77 = vector.load %arg2[%c0_86, %c0_87] : memref<16x72xf32, #tpu.memory_space<vmem>>, vector<16x72xf32>
    %c0_88 = arith.constant 0 : index
    %c0_89 = arith.constant 0 : index
    %78 = vector.load %arg7[%c0_88, %c0_89] : memref<72x384xf32, #tpu.memory_space<vmem>>, vector<72x384xf32>
    %cst_90 = arith.constant dense<0.000000e+00> : vector<16x384xf32>
    %79 = tpu.matmul %77, %78, %cst_90 {dimension_numbers = #tpu.dot_dimension_numbers<[1], [0], [0], [1], [0, 0, 1, 1], [], []>} : vector<16x72xf32>, vector<72x384xf32>, vector<16x384xf32> -> vector<16x384xf32>
    %c0_91 = arith.constant 0 : index
    %c0_92 = arith.constant 0 : index
    %80 = vector.load %arg3[%c0_91, %c0_92] : memref<16x1xf32, #tpu.memory_space<vmem>>, vector<16x1xf32>
    %81 = vector.broadcast %80 : vector<16x1xf32> to vector<16x384xf32>
    %82 = arith.addf %79, %81 : vector<16x384xf32>
    %cst_93 = arith.constant 0.000000e+00 : f32
    %83 = vector.broadcast %cst_93 : f32 to vector<16x384xf32>
    %84 = arith.maximumf %82, %83 : vector<16x384xf32>
    %c0_94 = arith.constant 0 : index
    %c0_95 = arith.constant 0 : index
    %85 = vector.load %arg4[%c0_94, %c0_95] : memref<8x16xf32, #tpu.memory_space<vmem>>, vector<8x16xf32>
    %cst_96 = arith.constant dense<0.000000e+00> : vector<8x384xf32>
    %86 = tpu.matmul %85, %84, %cst_96 {dimension_numbers = #tpu.dot_dimension_numbers<[1], [0], [0], [1], [0, 0, 1, 1], [], []>} : vector<8x16xf32>, vector<16x384xf32>, vector<8x384xf32> -> vector<8x384xf32>
    %c0_97 = arith.constant 0 : index
    %c0_98 = arith.constant 0 : index
    %87 = vector.load %arg5[%c0_97, %c0_98] : memref<8x1xf32, #tpu.memory_space<vmem>>, vector<8x1xf32>
    %88 = vector.broadcast %87 : vector<8x1xf32> to vector<8x384xf32>
    %89 = arith.addf %86, %88 : vector<8x384xf32>
    %c0_99 = arith.constant 0 : index
    %c0_100 = arith.constant 0 : index
    %c0_101 = arith.constant 0 : index
    %90 = vector.load %arg6[%c0_99, %c0_100, %c0_101] : memref<1x8x384xf32, #tpu.memory_space<vmem>>, vector<1x8x384xf32>
    %91 = vector.shape_cast %90 : vector<1x8x384xf32> to vector<8x384xf32>
    %92 = vector.shape_cast %89 : vector<8x384xf32> to vector<1x8x384xf32>
    tpu.vector_store %arg6[%c0_99, %c0_100, %c0_101], %92 {strides = array<i32>} : memref<1x8x384xf32, #tpu.memory_space<vmem>>, vector<1x8x384xf32>,
    return
  }
  func.func @transform_0(%arg0: i32) -> (i32, i32, i32) {
    %c0_i32 = arith.constant 0 : i32
    %c0_i32_0 = arith.constant 0 : i32
    %c0_i32_1 = arith.constant 0 : i32
    return %arg0, %c0_i32, %c0_i32_0 : i32, i32, i32
  }
  func.func @transform_1(%arg0: i32) -> (i32, i32) {
    %c0_i32 = arith.constant 0 : i32
    %c0_i32_0 = arith.constant 0 : i32
    %c0_i32_1 = arith.constant 0 : i32
    return %c0_i32, %c0_i32_0 : i32, i32
  }
  func.func @transform_2(%arg0: i32) -> (i32, i32) {
    %c0_i32 = arith.constant 0 : i32
    %c0_i32_0 = arith.constant 0 : i32
    %c0_i32_1 = arith.constant 0 : i32
    return %c0_i32, %c0_i32_0 : i32, i32
  }
  func.func @transform_3(%arg0: i32) -> (i32, i32) {
    %c0_i32 = arith.constant 0 : i32
    %c0_i32_0 = arith.constant 0 : i32
    %c0_i32_1 = arith.constant 0 : i32
    return %c0_i32, %c0_i32_0 : i32, i32
  }
  func.func @transform_4(%arg0: i32) -> (i32, i32) {
    %c0_i32 = arith.constant 0 : i32
    %c0_i32_0 = arith.constant 0 : i32
    %c0_i32_1 = arith.constant 0 : i32
    return %c0_i32, %c0_i32_0 : i32, i32
  }
  func.func @transform_5(%arg0: i32) -> (i32, i32, i32) {
    %c0_i32 = arith.constant 0 : i32
    %c0_i32_0 = arith.constant 0 : i32
    %c0_i32_1 = arith.constant 0 : i32
    return %arg0, %c0_i32, %c0_i32_0 : i32, i32, i32
  }
}

</mosaic_0001>

<bundles_post_ra>
// kernel: tpu_custom_call.1
= control target key start
LH: loop header
LB: loop body
LE: loop exit
PB: predicated region body
PF: predicated region fallthrough
CT: control target
= control target key end

     0   :  { %10 = vsyncpa [#allocation4], 0  ;;  %s1523_s0 = inlined_call_operand.vmem [shape: f32[2,4,288], index: 0, kind: input, shape index: {}]   ;;  %s1524_s1 = inlined_call_operand.hbm [shape: f32[16,72], index: 1, kind: input, shape index: {}]   ;;  %s1525_s2 = inlined_call_operand.vmem [shape: f32[16,1], index: 2, kind: input, shape index: {}]   ;;  %s1526_s3 = inlined_call_operand.vmem [shape: f32[8,16], index: 3, kind: input, shape index: {}]   ;;  %s1527_s4 = inlined_call_operand.vmem [shape: f32[8,1], index: 4, kind: input, shape index: {}]   ;;  %s1528_s5 = inlined_call_operand.hbm [shape: f32[2,8,384], index: 5, kind: output, shape index: {}]  }
   0x1   :  { %11 = vsyncpa [#allocation5], 0 }
   0x2   :  { %13 = vsyncpa [#allocation5 + $0x1], 0  ;;  %s1246_s18 = smov 0   ;;  %s1248_s19 = smov 0  }
   0x3   :  { %s1250_s20 = smov 0   ;;  %s1252_s21 = smov 0  }
   0x4 LB: > { %s1267_s22 = sadd.s32 4294967295, %s1198_s21   ;;  %s937_s23 = sadd.s32 4294967294, %s1198_s21   ;;  %s1198_s21 = sphi %s1252_s21, %s1544_s21   ;;  %s1194_s20 = sphi %s1250_s20, %s1543_s20   ;;  %s1190_s19 = sphi %s1248_s19, %s1542_s19   ;;  %s1186_s18 = sphi %s1246_s18, %s1541_s18  }
   0x5   : > { %s1271_s24 = sadd.s32 1, %s1198_s21   ;;  %s136_s25 = sadd.s32 1, %s1194_s20 }
   0x6   : > { %s133_s26 = ssub.s32 %s1198_s21, %s1271_s24  ;;  %p146_p0 = scmp.ne.s32.totalorder %s1194_s20, %s1190_s19 }
   0x7   : > { %p134_p1 = scmp.eq.s32.totalorder %s133_s26, 0  ;;  %p147_p2 = scmp.eq.s32.totalorder %s1267_s22, 1 }
   0x8   : > { %p152_p3 = scmp.ne.s32.totalorder %s1190_s19, %s1186_s18  ;;  %p153_p4 = scmp.eq.s32.totalorder %s937_s23, 1 }
   0x9   : > { %s1282_s27 = scalar_select %p134_p1, %s1194_s20, %s136_s25  }
   0xa   : > { %p1284_p5 = por %p147_p2, %p146_p0  ;;  %p1288_p6 = por %p153_p4, %p152_p3 }
   0xb   : > { %p938_p7 = scmp.ge.s32.totalorder %s1198_s21, 1  ;;  %p160_p8 = scmp.lt.s32.totalorder %s1198_s21, 3 }
   0xc   : > { %s1532_s28 = scalar_select %p1284_p5, 1, 0 }
   0xd   : > { %s1533_s29 = scalar_select %p1288_p6, 1, 0 }
   0xe   : > { %p1529_p9 = scmp.eq.s32.totalorder %s1267_s22, 0  ;;  %p1295_p10 = pnand %p938_p7, %p160_p8 }
   0xf   : > { %s1200_s6 = smov [#allocation3]   ;;  %s1104_s11 = scalar_lea.hbm %s1524_s1, 256 }
  0x10   : > { %s1534_s30 = scalar_select %p1295_p10, 1, 0 }
  0x11   : > { %s172_s7 = sshll.u32 %s1200_s6, 4  ;;  %p1043_p11 = pneg %p1295_p10  ;;  %s173_s7 = int_to_ptr.vmem [resolvable:$true] %s172_s7 }
  0x12   : > { %p1105_p13 = scmp.ne.s32.totalorder %s1524_s1, %s1104_s11  ;;  %p1111_p3 = scmp.lt.u32.totalorder %s1104_s11, %s1524_s1 }
  0x13   : > { %p1303_p12 = pnand %p1529_p9, %p1043_p11 }
  0x15   : > { %p1106_p0 = pneg %p1303_p12 }
  0x17   : > { %p1107_p1 = pnand %p1106_p0, %p1105_p13 }
  0x19   : > { %p1108_p2 = pneg %p1107_p1 }
  0x1b   : > { %p1113_p4 = pnand %p1111_p3, %p1108_p2 }
  0x1d   : > { %1116 = shalt.err (!%p1113_p4)
}
  0x1e   : > { %s1117_s16 = scalar_lea.vmem %s173_s7, 256  ;;  %p1125_p9 = scmp.lt.s32.totalorder %s173_s7, %s173_s7 }
  0x1f   : > { %p1118_p7 = scmp.ne.s32.totalorder %s173_s7, %s1117_s16  ;;  %p1126_p6 = scmp.lt.s32.totalorder %s1117_s16, %s1117_s16 }
  0x21   : > { %p1120_p8 = pnand %p1118_p7, %p1106_p0  ;;  %p1127_p5 = por %p1126_p6, %p1125_p9 }
  0x23   : > { %p1121_p11 = pneg %p1120_p8 }
  0x25   : > { %p1128_p10 = pnand %p1127_p5, %p1121_p11 }
  0x27   : > { %1131 = shalt.err (!%p1128_p10)
}
  0x28   : > { %s1201_s17 = smov 128   ;;  %s1202_s23 = smov 8  }
  0x29   : > { %1046 = dma.hbm_to_vmem [thread:$0]  (!%p1303_p12), %s1524_s1, 256, %s173_s7, [#allocation4], %s1201_s17, %s1201_s17, %s1202_s23  }
  0x2a   : > { %p1536_p13 = scmp.ne.s32.totalorder %s1534_s30, 0 }
  0x2b   : > { %p1537_p1 = scmp.eq.s32.totalorder (!%p1536_p13), %s1267_s22, 0 }
  0x2c   : > { %205 = sbr.rel (%p1536_p13) target bundleno = 686 (0x2ae), region = 40 }
  0x33   : > { %1177 = dma.done.wait (%p1537_p1), [#allocation4], 256   ;;  %p1538_p0 = pmov %p1537_p1 }
  0x34   : > { %p233_p5 = scmp.lt.s32.totalorder %s1267_s22, 1  ;;  %vm268_vm0 = vcmask 293888   ;;  %vm293_vm1 = vcmask 1047844   ;;  %v1203_v0 = vmov 0.0   ;;  %vm238_vm2 = vcmask 302080   ;;  %s1204_s10 = smov 36  }
  0x35   : > { %1179 = vsyncadd (%p1538_p0), [#allocation4], 4294967040  ;;  %269 = vst.msk [vmem:[#allocation2 + $0x18] sm:$0xff] %vm268_vm0, %v1203_v0  ;;  %602 = vmatprep.mubr.f32.mxu0 %v1203_v0  ;;  %vm263_vm3 = vcmask 1047852   ;;  %vm298_vm4 = vcmask 285696   ;;  %vm323_vm5 = vcmask 1047836  }
  0x36   : > { %265 = vst [vmem:[#allocation2 + $0x8] sm:$0xf0] %v1203_v0  ;;  %295 = vst [vmem:[#allocation2 + $0x20] sm:$0xf0] %v1203_v0  ;;  %s234_s30 = scalar_select %p233_p5, %s1267_s22, 1  ;;  %vm328_vm6 = vcmask 154624  }
  0x37   : > { %325 = vst [vmem:[#allocation2 + $0x38] sm:$0xf0] %v1203_v0  ;;  %355 = vst [vmem:[#allocation2 + $0x50] sm:$0xf0] %v1203_v0  ;;  %vm353_vm7 = vcmask 1047708   ;;  %s1205_s11 = smov 37  }
  0x38   : > { %385 = vst [vmem:[#allocation2 + $0x68] sm:$0xf0] %v1203_v0  ;;  %415 = vst [vmem:[#allocation2 + $0x80] sm:$0xf0] %v1203_v0  ;;  %s1035_s6 = smul.u32 12, %s234_s30  ;;  %vm270_vm8 = vcmask 1048096  }
  0x39   : > { %445 = vst [vmem:[#allocation2 + $0x98] sm:$0xf0] %v1203_v0  ;;  %459 = vst [vmem:[#allocation2 + $0xa8] sm:$0xf0] %v1203_v0  ;;  %vm296_vm9 = vcmask 556036   ;;  %vm240_vm10 = vcmask 1048104  }
  0x3a   : > { %460 = vst [vmem:[#allocation2 + $0xb0] sm:$0xf0] %v1203_v0  ;;  %486 = vst [vmem:[#allocation2 + $0xc0] sm:$0xf0] %v1203_v0  ;;  %s1358_s9 = scalar_lea.vmem %s1523_s0, %s1035_s6  ;;  %vm266_vm11 = vcmask 564228   ;;  %s1206_s12 = smov 35  }
  0x3b   : > { %487 = vst [vmem:[#allocation2 + $0xc8] sm:$0xf0] %v1203_v0  ;;  %294 = vst.msk [vmem:[#allocation2 + $0x18] sm:$0xf0] %vm293_vm1, %v1203_v0  ;;  %v1363_v1 = vld [vmem:[%s1358_s9] sm:$0xff]  ;;  %vm358_vm12 = vcmask 146432  }
  0x3c   : > { %239 = vst.msk [vmem:[#allocation2] sm:$0xff] %vm238_vm2, %v1203_v0  ;;  %277 = vrot.lane.b32.xlu1 %v1363_v1, %s1204_s10  ;;  %v1370_v2 = vcombine.high %v1363_v1, %v1363_v1  ;;  %247 = vrot.lane.b32.xlu0 %v1363_v1, %s1205_s11  ;;  %455 = vst [vmem:[#allocation2 + $0xa8] sm:$0xf] %v1363_v1  ;;  %vm383_vm13 = vcmask 1047700   ;;  %vm388_vm14 = vcmask 138240   ;;  %vm413_vm15 = vcmask 1047692  }
  0x3d   : > { %264 = vst.msk [vmem:[#allocation2] sm:$0xf0] %vm263_vm3, %v1203_v0  ;;  %s1207_s13 = smov 19   ;;  %vm330_vm1 = vcmask 1047960   ;;  %vm356_vm3 = vcmask 416772   ;;  %s1208_s14 = smov 18  }
  0x3e   : > { %299 = vst.msk [vmem:[#allocation2 + $0x30] sm:$0xff] %vm298_vm4, %v1203_v0  ;;  %456 = vst [vmem:[#allocation2 + $0xb0] sm:$0xf] %v1370_v2  ;;  %v273_v3 = vld [vmem:[%s1358_s9 + $0x8] sm:$0xf]  ;;  %s1209_s15 = smov 17  }
  0x3f   : > { %324 = vst.msk [vmem:[#allocation2 + $0x30] sm:$0xf0] %vm323_vm5, %v1203_v0  ;;  %v243_v4 = vld [vmem:[%s1358_s9 + $0x8] sm:$0xf]  ;;  %vm300_vm5 = vcmask 1048088   ;;  %s1210_s16 = smov 1  }
  0x40   : > { %329 = vst.msk [vmem:[#allocation2 + $0x48] sm:$0xff] %vm328_vm6, %v1203_v0  ;;  %279 = vrot.lane.b32.xlu1 %v1370_v2, %s1204_s10  ;;  %307 = vrot.lane.b32.xlu0 %v1363_v1, %s1206_s12  ;;  %v333_v5 = vld [vmem:[%s1358_s9 + $0x8] sm:$0xf]  ;;  %s1211_s17 = smov 127   ;;  %v1438_v12 = vld [vmem:[#allocation3] sm:$0xff]  ;;  %v519_v14 = vld [vmem:[%s1525_s2] sm:$0xff] }
  0x41   : > { %354 = vst.msk [vmem:[#allocation2 + $0x48] sm:$0xf0] %vm353_vm7, %v1203_v0  ;;  %vm326_vm7 = vcmask 547844   ;;  %v303_v6 = vld [vmem:[%s1358_s9 + $0x8] sm:$0xf]  ;;  %v1212_v15 = vmov 0  }
  0x42   : > { %271 = vst.msk [vmem:[#allocation2 + $0x28] sm:$0xff] %vm270_vm8, %v1203_v0  ;;  %vm418_vm8 = vcmask 7168   ;;  %v451_v7 = vld [vmem:[%s1358_s9 + $0x8] sm:$0xf]  ;;  %1102 = vset.pattern.permute.xlu1 %v1212_v15  ;;  %1101 = vset.pattern.permute.xlu0 %v1212_v15  ;;  %v697_v16 = vld [vmem:[%s1527_s4] sm:$0xff]  ;;  %p1539_p9 = scmp.ne.s32.totalorder %s1532_s28, 0 }
  0x43   : > { %297 = vst.msk [vmem:[#allocation2 + $0x28] sm:$0xf0] %vm296_vm9, %v1203_v0  ;;  %vm443_vm9 = vcmask 1047564   ;;  %v393_v8 = vld [vmem:[%s1358_s9 + $0x8] sm:$0xf]  ;;  %s1215_s25 = smov [#allocation6]  }
  0x44   : > { %241 = vst.msk [vmem:[#allocation2 + $0x10] sm:$0xff] %vm240_vm10, %v1203_v0  ;;  %309 = vrot.lane.b32.xlu1 %v1370_v2, %s1206_s12  ;;  %249 = vrot.lane.b32.xlu0 %v1370_v2, %s1205_s11  ;;  %vm390_vm10 = vcmask 1047944   ;;  %v363_v9 = vld [vmem:[%s1358_s9 + $0x8] sm:$0xf]  ;;  %s1136_s26 = sshll.u32 %s1215_s25, 4  ;;  %s1137_s26 = int_to_ptr.vmem [resolvable:$false] %s1136_s26 }
  0x45   : > { %267 = vst.msk [vmem:[#allocation2 + $0x10] sm:$0xf0] %vm266_vm11, %v1203_v0  ;;  %vm416_vm11 = vcmask 400388   ;;  %v423_v10 = vld [vmem:[%s1358_s9 + $0x8] sm:$0xf]  ;;  %s1138_s30 = scalar_lea.vmem %s1137_s26, 768 }
  0x46   : > { %359 = vst.msk [vmem:[#allocation2 + $0x60] sm:$0xff] %vm358_vm12, %v1203_v0  ;;  %v466_v11 = vld [vmem:[%s1358_s9 + $0x8] sm:$0xf] }
  0x47   : > { %384 = vst.msk [vmem:[#allocation2 + $0x60] sm:$0xf0] %vm383_vm13, %v1203_v0  ;;  %vm360_vm13 = vcmask 1047952   ;;  %v520_v13 = vld [vmem:[%s1525_s2 + $0x8] sm:$0xff] }
  0x48   : > { %389 = vst.msk [vmem:[#allocation2 + $0x78] sm:$0xff] %vm388_vm14, %v1203_v0  ;;  %339 = vrot.lane.b32.xlu1 %v1370_v2, %s1207_s13  ;;  %337 = vrot.lane.b32.xlu0 %v1363_v1, %s1207_s13 }
  0x49   : > { %414 = vst.msk [vmem:[#allocation2 + $0x78] sm:$0xf0] %vm413_vm15, %v1203_v0  ;;  %vm386_vm15 = vcmask 408580  }
  0x4a   : > { %331 = vst.msk [vmem:[#allocation2 + $0x58] sm:$0xff] %vm330_vm1, %v1203_v0  ;;  %vm420_vm1 = vcmask 1047816  }
  0x4b   : > { %357 = vst.msk [vmem:[#allocation2 + $0x58] sm:$0xf0] %vm356_vm3, %v1203_v0  ;;  %vm446_vm3 = vcmask 269316  }
  0x4c   : > { %301 = vst.msk [vmem:[#allocation2 + $0x40] sm:$0xff] %vm300_vm5, %v1203_v0  ;;  %281 = vrot.lane.b32.xlu1 %v273_v3, %s1204_s10  ;;  %251 = vrot.lane.b32.xlu0 %v243_v4, %s1205_s11  ;;  %vm448_vm5 = vcmask 1047808   ;;  %s230_s10 = sand.u32 1, %s1190_s19  }
  0x4d   : > { %327 = vst.msk [vmem:[#allocation2 + $0x40] sm:$0xf0] %vm326_vm7, %v1203_v0  ;;  %vm457_vm7 = vcmask 257024   ;;  %s1034_s11 = smul.u32 24, %s230_s10 }
  0x4e   : > { %419 = vst.msk [vmem:[#allocation2 + $0x90] sm:$0xff] %vm418_vm8, %v1203_v0 }
  0x4f   : > { %444 = vst.msk [vmem:[#allocation2 + $0x90] sm:$0xf0] %vm443_vm9, %v1203_v0  ;;  %vm461_vm9 = vcmask 261124  }
  0x50   : > { %369 = vrot.lane.b32.xlu1 %v1370_v2, %s1208_s14  ;;  %367 = vrot.lane.b32.xlu0 %v1363_v1, %s1208_s14  ;;  %391 = vst.msk [vmem:[#allocation2 + $0x88] sm:$0xff] %vm390_vm10, %v1203_v0  ;;  %vm463_vm10 = vcmask 1047800  }
  0x51   : > { %417 = vst.msk [vmem:[#allocation2 + $0x88] sm:$0xf0] %vm416_vm11, %v1203_v0  ;;  %vm488_vm11 = vcmask 252932  }
  0x52   : > { %361 = vst.msk [vmem:[#allocation2 + $0x70] sm:$0xff] %vm360_vm13, %v1203_v0  ;;  %vm531_vm13 = vcmask 588800  }
  0x53   : > { %387 = vst.msk [vmem:[#allocation2 + $0x70] sm:$0xf0] %vm386_vm15, %v1203_v0  ;;  %985 = vmatprep.mubr.msk.f32.mxu1 %vm531_vm13, %v1438_v12  ;;  %vm288_vm15 = vcmask 1043744  }
  0x54   : > { %399 = vrot.lane.b32.xlu1 %v1370_v2, %s1209_s15  ;;  %397 = vrot.lane.b32.xlu0 %v1363_v1, %s1209_s15  ;;  %421 = vst.msk [vmem:[#allocation2 + $0xa0] sm:$0xff] %vm420_vm1, %v1203_v0  ;;  %vm258_vm1 = vcmask 1043752  }
  0x55   : > { %449 = vst.msk [vmem:[#allocation2 + $0xb8] sm:$0xff] %vm448_vm5, %v1203_v0  ;;  %vm348_vm5 = vcmask 1043608  }
  0x56   : > { %447 = vst.msk [vmem:[#allocation2 + $0xa0] sm:$0xf0] %vm446_vm3, %v1203_v0  ;;  %vm318_vm3 = vcmask 1043736  }
  0x57   : > { %458 = vst.msk [vmem:[#allocation2 + $0xb8] sm:$0xf] %vm457_vm7, %v451_v7  ;;  %vm291_vm7 = vcmask 551936  }
  0x58   : > { %341 = vrot.lane.b32.xlu1 %v333_v5, %s1207_s13  ;;  %311 = vrot.lane.b32.xlu0 %v303_v6, %s1206_s12  ;;  %462 = vst.msk [vmem:[#allocation2 + $0xb8] sm:$0xf0] %vm461_vm9, %v1203_v0  ;;  %vm261_vm9 = vcmask 560128   ;;  %s1036_s12 = smul.u32 384, %s1267_s22  ;;  %s232_s13 = scalar_lea.vmem [#allocation6], %s1034_s11 }
  0x59   : > { %464 = vst.msk [vmem:[#allocation2 + $0xd0] sm:$0xff] %vm463_vm10, %v1203_v0  ;;  %vm378_vm10 = vcmask 1043600   ;;  %s852_s22 = scalar_lea.sflag [#allocation5], %s230_s10 }
  0x5a   : > { %489 = vst.msk [vmem:[#allocation2 + $0xd0] sm:$0xf0] %vm488_vm11, %v1203_v0  ;;  %vm321_vm11 = vcmask 543744  }
  0x5c   : > { %429 = vrot.lane.b32.xlu1 %v1370_v2, %s1210_s16  ;;  %427 = vrot.lane.b32.xlu0 %v1363_v1, %s1210_s16 }
  0x60   : > { %401 = vrot.lane.b32.xlu1 %v393_v8, %s1209_s15  ;;  %371 = vrot.lane.b32.xlu0 %v363_v9, %s1208_s14  ;;  %s866_s14 = sshll.u32 %s232_s13, 4  ;;  %s1483_s14 = int_to_ptr.vmem [resolvable:$true] %s866_s14 }
  0x61   : > { %s1132_s23 = scalar_lea.vmem %s1483_s14, 384  ;;  %p1139_p2 = scmp.lt.s32.totalorder %s1483_s14, %s1137_s26 }
  0x62   : > { %p1133_p6 = scmp.ne.s32.totalorder %s1483_s14, %s1132_s23  ;;  %p1140_p3 = scmp.lt.s32.totalorder %s1138_s30, %s1132_s23 }
  0x64   : > { %472 = vrot.lane.b32.xlu1 %v1370_v2, %s1211_s17  ;;  %431 = vrot.lane.b32.xlu0 %v423_v10, %s1210_s16  ;;  %p1134_p10 = pnand %p1133_p6, %p1539_p9  ;;  %p1141_p4 = por %p1140_p3, %p1139_p2 }
  0x66   : > { %p1135_p12 = pneg %p1134_p10 }
  0x68   : > { %470 = vrot.lane.b32.xlu1 %v1363_v1, %s1211_s17  ;;  %474 = vrot.lane.b32.xlu0 %v466_v11, %s1211_s17  ;;  %v514_v11 = vld [vmem:[#allocation2 + $0xb0] sm:$0xff]  ;;  %s1481_s17 = scalar_lea.hbm %s1528_s5, %s1036_s12  ;;  %p1142_p7 = pnand %p1141_p4, %p1135_p12 }
  0x6c   : > { %528 = vperm.xlu1 %1102, %v520_v13   ;;  %523 = vperm.xlu0 %1101, %v519_v14  }
  0x70   : > { %700 = vperm.xlu1 %1102, %v697_v16   ;;  %v513_v16 = vld [vmem:[#allocation2 + $0xa8] sm:$0xff] }
  0xae   : > { %v278_v17 = vpop.permute.xlu1 %277  ;;  %v248_v18 = vpop.permute.xlu0 %247 }
  0xaf   : > { %289 = vst.msk [vmem:[#allocation2 + $0x18] sm:$0xf] %vm288_vm15, %v278_v17  ;;  %vm438_vm15 = vcmask 1043464  }
  0xb0   : > { %259 = vst.msk [vmem:[#allocation2] sm:$0xf] %vm258_vm1, %v248_v18  ;;  %vm411_vm1 = vcmask 396288  }
  0xb2   : > { %v280_v19 = vpop.permute.xlu1 %279  ;;  %v308_v20 = vpop.permute.xlu0 %307 }
  0xb3   : > { %v283_v21 = vsel %vm268_vm0, %v278_v17, %v280_v19  ;;  %319 = vst.msk [vmem:[#allocation2 + $0x30] sm:$0xf] %vm318_vm3, %v308_v20  ;;  %vm381_vm3 = vcmask 404480  }
  0xb4   : > { %290 = vst [vmem:[#allocation2 + $0x20] sm:$0xf] %v283_v21 }
  0xb6   : > { %v310_v22 = vpop.permute.xlu1 %309  ;;  %v250_v23 = vpop.permute.xlu0 %249  ;;  %v495_v32 = vld [vmem:[#allocation2 + $0x18] sm:$0xff] }
  0xb7   : > { %v313_v24 = vsel %vm298_vm4, %v308_v20, %v310_v22  ;;  %v253_v25 = vsel %vm238_vm2, %v248_v18, %v250_v23  ;;  %v492_v31 = vld [vmem:[#allocation2] sm:$0xff] }
  0xb8   : > { %320 = vst [vmem:[#allocation2 + $0x38] sm:$0xf] %v313_v24  ;;  %260 = vst [vmem:[#allocation2 + $0x8] sm:$0xf] %v253_v25  ;;  %v997_v38 = vpack.c.bf16 %v495_v32, %v492_v31 }
  0xba   : > { %v340_v26 = vpop.permute.xlu1 %339  ;;  %v338_v27 = vpop.permute.xlu0 %337  ;;  %v498_v46 = vld [vmem:[#allocation2 + $0x30] sm:$0xff] }
  0xbb   : > { %v343_v28 = vsel %vm328_vm6, %v338_v27, %v340_v26  ;;  %349 = vst.msk [vmem:[#allocation2 + $0x48] sm:$0xf] %vm348_vm5, %v338_v27  ;;  %v496_v36 = vld [vmem:[#allocation2 + $0x20] sm:$0xff] }
  0xbc   : > { %350 = vst [vmem:[#allocation2 + $0x50] sm:$0xf] %v343_v28  ;;  %v515_v28 = vld [vmem:[#allocation2 + $0xb8] sm:$0xff] }
  0xbe   : > { %v282_v29 = vpop.permute.xlu1 %281  ;;  %v252_v30 = vpop.permute.xlu0 %251 }
  0xbf   : > { %v284_v33 = vsel %vm268_vm0, %v280_v19, %v282_v29  ;;  %v254_v34 = vsel %vm238_vm2, %v250_v23, %v252_v30  ;;  %v493_v35 = vld [vmem:[#allocation2 + $0x8] sm:$0xff]  ;;  %v499_v43 = vld [vmem:[#allocation2 + $0x38] sm:$0xff]  ;;  %vm408_vm0 = vcmask 1043592   ;;  %vm351_vm2 = vcmask 412672  }
  0xc0   : > { %292 = vst.msk [vmem:[#allocation2 + $0x28] sm:$0xf] %vm291_vm7, %v284_v33  ;;  %v995_v37 = vpack.c.bf16 %v496_v36, %v493_v35  ;;  %v1213_v35 = vmov 0.0|0.0  }
  0xc1   : > { %262 = vst.msk [vmem:[#allocation2 + $0x10] sm:$0xf] %vm261_vm9, %v254_v34  ;;  %v491_v34 = vld [vmem:[#allocation3 + $0x8] sm:$0xff] }
  0xc2   : > { %v370_v39 = vpop.permute.xlu1 %369  ;;  %996 = vmatprep.subr.bf16.mxu0 %v995_v37  ;;  %v368_v40 = vpop.permute.xlu0 %367  ;;  %v501_v41 = vld [vmem:[#allocation2 + $0x48] sm:$0xff] }
  0xc3   : > { %v373_v42 = vsel %vm358_vm12, %v368_v40, %v370_v39  ;;  %379 = vst.msk [vmem:[#allocation2 + $0x60] sm:$0xf] %vm378_vm10, %v368_v40  ;;  %998 = vmatpush1.bf16.msra.mxu0 %v997_v38  ;;  %v502_v44 = vld [vmem:[#allocation2 + $0x50] sm:$0xff]  ;;  %v1001_v47 = vpack.c.bf16 %v501_v41, %v498_v46 }
  0xc4   : > { %380 = vst [vmem:[#allocation2 + $0x68] sm:$0xf] %v373_v42  ;;  %v999_v45 = vpack.c.bf16 %v502_v44, %v499_v43 }
  0xc6   : > { %v400_v48 = vpop.permute.xlu1 %399  ;;  %v398_v49 = vpop.permute.xlu0 %397  ;;  %1000 = vmatprep.subr.bf16.mxu0 %v999_v45 }
  0xc7   : > { %v403_v50 = vsel %vm388_vm14, %v398_v49, %v400_v48  ;;  %409 = vst.msk [vmem:[#allocation2 + $0x78] sm:$0xf] %vm408_vm0, %v398_v49  ;;  %1002 = vmatpush1.bf16.msra.mxu0 %v1001_v47  ;;  %v497_v52 = vld [vmem:[#allocation2 + $0x28] sm:$0xff] }
  0xc8   : > { %v494_v51 = vld [vmem:[#allocation2 + $0x10] sm:$0xff]  ;;  %410 = vst [vmem:[#allocation2 + $0x80] sm:$0xf] %v403_v50 }
  0xc9   : > { %v1011_v53 = vpack.c.bf16 %v497_v52, %v494_v51 }
  0xca   : > { %v342_v54 = vpop.permute.xlu1 %341  ;;  %v312_v55 = vpop.permute.xlu0 %311  ;;  %v504_v2 = vld [vmem:[#allocation2 + $0x60] sm:$0xff] }
  0xcb   : > { %1012 = vmatprep.subr.bf16.mxu1 %v1011_v53  ;;  %v344_v56 = vsel %vm328_vm6, %v340_v26, %v342_v54  ;;  %v314_v57 = vsel %vm298_vm4, %v310_v22, %v312_v55  ;;  %v505_v62 = vld [vmem:[#allocation2 + $0x68] sm:$0xff]  ;;  %vm441_vm4 = vcmask 265216   ;;  %vm476_vm6 = vcmask 1039360  }
  0xcc   : > { %1014 = vmatpush3.bf16.msra.mxu1 %v1011_v53  ;;  %352 = vst.msk [vmem:[#allocation2 + $0x58] sm:$0xf] %vm351_vm2, %v344_v56 }
  0xcd   : > { %322 = vst.msk [vmem:[#allocation2 + $0x40] sm:$0xf] %vm321_vm11, %v314_v57  ;;  %v696_v57 = vld [vmem:[%s1526_s3] sm:$0xff] }
  0xce   : > { %v430_v58 = vpop.permute.xlu1 %429  ;;  %v428_v59 = vpop.permute.xlu0 %427  ;;  %v507_v60 = vld [vmem:[#allocation2 + $0x78] sm:$0xff] }
  0xcf   : > { %v433_v61 = vsel %vm418_vm8, %v428_v59, %v430_v58  ;;  %439 = vst.msk [vmem:[#allocation2 + $0x90] sm:$0xf] %vm438_vm15, %v428_v59  ;;  %v508_v63 = vld [vmem:[#allocation2 + $0x80] sm:$0xff]  ;;  %v1005_v3 = vpack.c.bf16 %v507_v60, %v504_v2 }
  0xd0   : > { %440 = vst [vmem:[#allocation2 + $0x98] sm:$0xf] %v433_v61  ;;  %v1003_v1 = vpack.c.bf16 %v508_v63, %v505_v62 }
  0xd2   : > { %v402_v4 = vpop.permute.xlu1 %401  ;;  %v372_v5 = vpop.permute.xlu0 %371  ;;  %1004 = vmatprep.subr.bf16.mxu0 %v1003_v1 }
  0xd3   : > { %v404_v6 = vsel %vm388_vm14, %v400_v48, %v402_v4  ;;  %v374_v7 = vsel %vm358_vm12, %v370_v39, %v372_v5  ;;  %1006 = vmatpush1.bf16.msra.mxu0 %v1005_v3  ;;  %v503_v9 = vld [vmem:[#allocation2 + $0x58] sm:$0xff]  ;;  %vm484_vm12 = vcmask 248832   ;;  %vm1214_vm14 = vmmov 0  }
  0xd4   : > { %v500_v8 = vld [vmem:[#allocation2 + $0x40] sm:$0xff]  ;;  %412 = vst.msk [vmem:[#allocation2 + $0x88] sm:$0xf] %vm411_vm1, %v404_v6 }
  0xd5   : > { %382 = vst.msk [vmem:[#allocation2 + $0x70] sm:$0xf] %vm381_vm3, %v374_v7  ;;  %v1015_v10 = vpack.c.bf16 %v503_v9, %v500_v8 }
  0xd6   : > { %v473_v13 = vpop.permute.xlu1 %472  ;;  %v432_v14 = vpop.permute.xlu0 %431  ;;  %v510_v15 = vld [vmem:[#allocation2 + $0x90] sm:$0xff] }
  0xd7   : > { %1016 = vmatprep.subr.bf16.mxu1 %v1015_v10  ;;  %v434_v17 = vsel %vm418_vm8, %v430_v58, %v432_v14  ;;  %v511_v18 = vld [vmem:[#allocation2 + $0x98] sm:$0xff]  ;;  %v1009_v20 = vpack.c.bf16 %v513_v16, %v510_v15  ;;  %vm703_vm8 = vcmask 130048  }
  0xd8   : > { %1018 = vmatpush3.bf16.msra.mxu1 %v1015_v10  ;;  %442 = vst.msk [vmem:[#allocation2 + $0xa0] sm:$0xf] %vm441_vm4, %v434_v17  ;;  %v1007_v19 = vpack.c.bf16 %v514_v11, %v511_v18 }
  0xda   : > { %v471_v21 = vpop.permute.xlu1 %470  ;;  %v475_v22 = vpop.permute.xlu0 %474  ;;  %1008 = vmatprep.subr.bf16.mxu0 %v1007_v19 }
  0xdb   : > { %v477_v23 = vsel %vm476_vm6, %v471_v21, %v473_v13  ;;  %v478_v24 = vsel %vm476_vm6, %v473_v13, %v475_v22  ;;  %485 = vst.msk [vmem:[#allocation2 + $0xd0] sm:$0xf] %vm484_vm12, %v475_v22  ;;  %1010 = vmatpush1.bf16.msra.mxu0 %v1009_v20  ;;  %v509_v26 = vld [vmem:[#allocation2 + $0x88] sm:$0xff] }
  0xdc   : > { %v506_v25 = vld [vmem:[#allocation2 + $0x70] sm:$0xff]  ;;  %482 = vst [vmem:[#allocation2 + $0xc0] sm:$0xf] %v477_v23  ;;  %483 = vst [vmem:[#allocation2 + $0xc8] sm:$0xf] %v478_v24 }
  0xdd   : > { %v1019_v27 = vpack.c.bf16 %v509_v26, %v506_v25 }
  0xdf   : > { %1020 = vmatprep.subr.bf16.mxu1 %v1019_v27  ;;  %v512_v29 = vld [vmem:[#allocation2 + $0xa0] sm:$0xff] }
  0xe0   : > { %1022 = vmatpush3.bf16.msra.mxu1 %v1019_v27  ;;  %v1023_v30 = vpack.c.bf16 %v515_v28, %v512_v29 }
  0xe2   : > { %1024 = vmatprep.subr.bf16.mxu1 %v1023_v30  ;;  %v518_v31 = vld [vmem:[#allocation2 + $0xd0] sm:$0xff] }
  0xe3   : > { %v517_v32 = vld [vmem:[#allocation2 + $0xc8] sm:$0xff]  ;;  %v516_v33 = vld [vmem:[#allocation2 + $0xc0] sm:$0xff] }
  0xe4   : > { %1026 = vmatpush3.bf16.msra.mxu1 %v1023_v30  ;;  %554 = vmatprep.subr.mxu0 %v517_v32 }
  0xe5   : > { %983 = vmatprep.subr.mxu1 %v518_v31  ;;  %555 = vmatpush1.msra.mxu0 %v516_v33 }
  0xe6   : > { %944 = vmatmul.mubr.msk.f32.vlgmr.msra.gmra.mrb[0].mxu0 %vm531_vm13, %v1438_v12  ;;  %1031 = vmatprep.subr.bf16.mxu0 %v1213_v35 }
  0xe7   : > { %608 = vmatprep.mubr.f32.mxu0 %v1203_v0 }
  0xe8   : > { %984 = vmatpush3.msra.mxu1 %v518_v31 }
  0xe9   : > { %986 = vmatmul.mubr.msk.f32.vlgmr.msra.gmra.mrb[0].mxu1 %vm531_vm13, %v491_v34 }
  0xea   : > { %771 = vmatprep.mubr.f32.mxu1 %v1203_v0  ;;  %945 = vmatmul.mubr.msk.f32.gmra.mrb[2].mxu0 %vm531_vm13, %v491_v34 }
  0xeb   : > { %992 = vmatprep.mubr.msk.f32.mxu0 %vm1214_vm14, %v1203_v0  ;;  %v524_v36 = vpop.permute.xlu0 %523  ;;  %v529_v39 = vpop.permute.xlu1 %528 }
  0xef   : > { %v701_v58 = vpop.permute.xlu1 %700 }
 0x1b9   : > { %v604_v37 = vpop.f32.mrb[0].mxu0 }
 0x1ba   : > { %v606_v38 = vpop.f32.mrb[1].mxu0  ;;  %v605_v12 = vadd.f32 %v604_v37, %v524_v36 }
 0x1bb   : > { %v607_v43 = vadd.f32 %v606_v38, %v524_v36 }
 0x1bc   : > { %v987_v40 = vpop.f32.mrb[0].mxu1  ;;  %v690_v51 = vmax.f32 %v605_v12, 0.0 }
 0x1bd   : > { %v687_v41 = vadd.f32 %v987_v40, %v529_v39  ;;  %v681_v42 = vpop.f32.mrb[1].mxu1  ;;  %v610_v45 = vpop.f32.mrb[2].mxu0  ;;  %v691_v0 = vmax.f32 %v607_v43, 0.0 }
 0x1be   : > { %v682_v44 = vadd.f32 %v681_v42, %v524_v36  ;;  %v611_v47 = vadd.f32 %v610_v45, %v529_v39  ;;  %v612_v48 = vpop.f32.mrb[3].mxu0 }
 0x1bf   : > { %v695_v46 = vmax.f32 %v687_v41, 0.0  ;;  %v613_v50 = vadd.f32 %v612_v48, %v529_v39 }
 0x1c0   : > { %v692_v49 = vmax.f32 %v682_v44, 0.0  ;;  %v693_v52 = vmax.f32 %v611_v47, 0.0 }
 0x1c1   : > { %v694_v54 = vmax.f32 %v613_v50, 0.0 }
 0x1c2   : > { %v1032_v53 = vpack.c.bf16 %v695_v46, %v692_v49  ;;  %v1029_v55 = vpack.c.bf16 %v693_v52, %v690_v51 }
 0x1c3   : > { %v1027_v56 = vpack.c.bf16 %v694_v54, %v691_v0 }
 0x1c4   : > { %1033 = vmatpush3.bf16.msra.mxu0 %v1032_v53 }
 0x1c5   : > { %1028 = vmatprep.subr.bf16.mxu1 %v1027_v56 }
 0x1c6   : > { %1030 = vmatpush1.bf16.msra.mxu1 %v1029_v55 }
 0x1c7   : > { %993 = vmatmul.mubr.msk.f32.vlgmr.msra.gmra.mrb[4].mxu0 %vm703_vm8, %v696_v57 }
 0x1c9   : > { %948 = vmatmul.mubr.msk.f32.vlgmr.msra.gmra.mrb[2].mxu1 %vm703_vm8, %v696_v57 }
 0x29a   : > { %v844_v59 = vpop.f32.mrb[4].mxu0 }
 0x29b   : > { %v845_v60 = vadd.f32 %v844_v59, %v701_v58  ;;  %v994_v61 = vpop.f32.mrb[5].mxu0 }
 0x29c   : > { %v773_v62 = vpop.f32.mrb[2].mxu1 }
 0x29d   : > { %850 = vst [vmem:[%s232_s13 + $0x10] sm:$0xff] %v845_v60  ;;  %v774_v63 = vadd.f32 %v773_v62, %v701_v58  ;;  %v775_v1 = vpop.f32.mrb[3].mxu1 }
 0x29e   : > { %v776_v2 = vadd.f32 %v775_v1, %v701_v58 }
 0x29f   : > { %848 = vst [vmem:[%s232_s13] sm:$0xff] %v774_v63 }
 0x2a0   : > { %849 = vst [vmem:[%s232_s13 + $0x8] sm:$0xff] %v776_v2 }
 0x2a1   : > { %1145 = shalt.err (!%p1142_p7)
}
 0x2a2   : > { %s1146_s6 = scalar_lea.hbm %s1481_s17, 384  ;;  %s1150_s9 = scalar_lea.hbm %s1528_s5, 768 }
 0x2a3   : > { %p1147_p8 = scmp.ne.s32.totalorder %s1481_s17, %s1146_s6  ;;  %p1151_p1 = scmp.lt.u32.totalorder %s1481_s17, %s1528_s5 }
 0x2a4   : > { %p1152_p0 = scmp.lt.u32.totalorder %s1150_s9, %s1146_s6  ;;  %p1154_p6 = scmp.lt.u32.totalorder %s1146_s6, %s1481_s17 }
 0x2a5   : > { %p1148_p11 = pnand %p1147_p8, %p1539_p9 }
 0x2a6   : > { %p1153_p5 = por %p1152_p0, %p1151_p1 }
 0x2a7   : > { %p1149_p13 = pneg %p1148_p11 }
 0x2a8   : > { %p1155_p10 = por %p1154_p6, %p1153_p5 }
 0x2aa   : > { %p1156_p12 = pnand %p1155_p10, %p1149_p13 }
 0x2ac   : > { %1159 = shalt.err (!%p1156_p12)
}
 0x2ad   : > { %1041 = dma.vmem_to_hbm [thread:$0]  (%p1539_p9), %s1483_s14, 384, %s1481_s17, %s852_s22  }
 0x2ae PF: > { %p1053_p2 = scmp.ge.s32.totalorder %s1198_s21, 2  ;;  %s878_s12 = sand.u32 1, %s1186_s18  }
 0x2af   : > { %p1540_p3 = scmp.ne.s32.totalorder %s1533_s29, 0  ;;  %s879_s13 = scalar_lea.sflag [#allocation5], %s878_s12 }
 0x2b1   : > { %p1048_p4 = pnand %p1053_p2, %p1540_p3 }
 0x2b3   : > { %1181 = dma.done.wait (!%p1048_p4), %s879_s13, 384  }
 0x2b4   : > { %1183 = vsyncadd (!%p1048_p4), %s879_s13, 4294966912  ;;  %p16_p7 = scmp.ge.s32.totalorder %s1271_s24, 4   ;;  %s1541_s18 = smov %s1190_s19 }
 0x2b5   : > { %s1542_s19 = smov %s1194_s20  ;;  %s1543_s20 = smov %s1282_s27 }
 0x2b6   : > { %s1544_s21 = smov %s1271_s24  ;;  %18 = sbr.rel (!%p16_p7) target bundleno = 4 (0x4), region = 80 }
 0x2bd   :  { %884 = vsyncpa [#allocation4], 1 }
 0x2be   :  { %886 = vsyncpa [#allocation4 + $0x1], 1 }
 0x2bf   :  { %887 = vsyncpa [#allocation5], 1 }
 0x2c0   :  { %889 = vsyncpa [#allocation5 + $0x1], 1 }

</bundles_post_ra>
